<compile_context>
chip_gen: v7x
topology: tpu7x:2x2x1
jax: 0.10.0
libtpu: 0.0.40
codegen_flags: <defaults>
</compile_context>

<pallas_src>
import jax
import jax.numpy as jnp
from jax.experimental import pallas as pl
from jax.experimental.pallas import tpu as pltpu

LN_EPS = 1e-12          # BERT layer-norm epsilon
MASK_NEG = -10000.0     # classic BERT additive attention-mask bias


def _vmem_limit_bytes():
    """Generation-dependent VMEM cap: ~100 MiB on v5e/v6e (128 MiB), ~48 MiB on v7x (64 MiB)."""
    try:
        info = pltpu.get_tpu_info()
        cap = int(getattr(info, "vmem_capacity_bytes", 0) or 0)
        if cap > 0:
            return int(min(cap - 16 * 1024 * 1024, 100 * 1024 * 1024))
    except Exception:
        pass
    return 48 * 1024 * 1024


VMEM_LIMIT_BYTES = _vmem_limit_bytes()


def _pick_tile(dim, pref, align):
    """Largest tile <= pref that divides `dim` and is `align`-aligned, else full dim."""
    if dim <= pref:
        return dim
    for t in range(pref, 0, -1):
        if dim % t == 0 and t % align == 0:
            return t
    return dim


# ----------------------------- Pallas kernels ------------------------------
# Encoder linears: K kept whole -> single MXU pass per M tile, weight resident.

def _mm_bias_kernel(x_ref, w_ref, b_ref, o_ref):
    acc = jnp.dot(x_ref[...], w_ref[...], preferred_element_type=jnp.float32)
    o_ref[...] = (acc + b_ref[...]).astype(o_ref.dtype)


def _mm_bias_gelu_kernel(x_ref, w_ref, b_ref, o_ref):
    h = jnp.dot(x_ref[...], w_ref[...],
                preferred_element_type=jnp.float32) + b_ref[...]
    # TODO(synk): HF BERT uses exact (erf) GELU; tanh approximation used here.
    o_ref[...] = jax.nn.gelu(h, approximate=True).astype(o_ref.dtype)


def _mm_bias_add_ln_kernel(x_ref, w_ref, b_ref, r_ref, g_ref, be_ref, o_ref):
    h = (jnp.dot(x_ref[...], w_ref[...], preferred_element_type=jnp.float32)
         + b_ref[...] + r_ref[...].astype(jnp.float32))
    mu = jnp.mean(h, axis=-1, keepdims=True)
    var = jnp.mean(jnp.square(h - mu), axis=-1, keepdims=True)
    o_ref[...] = ((h - mu) * jax.lax.rsqrt(var + LN_EPS)
                  * g_ref[...] + be_ref[...]).astype(o_ref.dtype)


# Classifier (vocab-tiled, online LSE statistics) --------------------------

def _mm_bias_ce_kernel(x_ref, w_ref, b_ref, y_ref, loss_ref, valid_ref,
                       m_sc, l_sc, pick_sc):
    v = pl.program_id(1)
    tv = w_ref.shape[1]

    @pl.when(v == 0)
    def _():
        m_sc[...] = jnp.full_like(m_sc, -jnp.inf)
        l_sc[...] = jnp.zeros_like(l_sc)
        pick_sc[...] = jnp.zeros_like(pick_sc)

    logits = (jnp.dot(x_ref[...], w_ref[...], preferred_element_type=jnp.float32)
              + b_ref[...])                                   # (tm, tv) f32
    labels = y_ref[...]                                       # (tm, 1) i32
    col = jax.lax.broadcasted_iota(jnp.int32, logits.shape, 1) + v * tv
    pick_sc[...] += jnp.sum(jnp.where(col == labels, logits, 0.0),
                            axis=-1, keepdims=True)
    m_prev = m_sc[...]
    m_new = jnp.maximum(m_prev, jnp.max(logits, axis=-1, keepdims=True))
    l_sc[...] = (l_sc[...] * jnp.exp(m_prev - m_new)
                 + jnp.sum(jnp.exp(logits - m_new), axis=-1, keepdims=True))
    m_sc[...] = m_new

    @pl.when(v == pl.num_programs(1) - 1)
    def _():
        valid = (y_ref[...] != -1).astype(jnp.float32)        # ignore_index = -1
        lse = m_sc[...] + jnp.log(l_sc[...])
        loss_ref[...] = (lse - pick_sc[...]) * valid
        valid_ref[...] = valid


def _mm_bias_logits_lse_kernel(x_ref, w_ref, b_ref, logits_ref, lse_ref,
                               m_sc, l_sc):
    v = pl.program_id(1)

    @pl.when(v == 0)
    def _():
        m_sc[...] = jnp.full_like(m_sc, -jnp.inf)
        l_sc[...] = jnp.zeros_like(l_sc)

    logits = (jnp.dot(x_ref[...], w_ref[...], preferred_element_type=jnp.float32)
              + b_ref[...])                                   # (tm, tv) f32
    logits_ref[...] = logits
    m_prev = m_sc[...]
    m_new = jnp.maximum(m_prev, jnp.max(logits, axis=-1, keepdims=True))
    l_sc[...] = (l_sc[...] * jnp.exp(m_prev - m_new)
                 + jnp.sum(jnp.exp(logits - m_new), axis=-1, keepdims=True))
    m_sc[...] = m_new

    @pl.when(v == pl.num_programs(1) - 1)
    def _():
        lse_ref[...] = m_sc[...] + jnp.log(l_sc[...])


def _softmax_finalize_kernel(logits_ref, lse_ref, o_ref):
    # exact normalization: exp(logit - logsumexp); no approximate reciprocal.
    o_ref[...] = jnp.exp(logits_ref[...] - lse_ref[...]).astype(o_ref.dtype)


# Embeddings + LayerNorm fused ----------------------------------------------

def _emb_layernorm_kernel(word_ref, pos_ref, typ_ref, g_ref, b_ref, o_ref):
    x = (word_ref[0].astype(jnp.float32) + pos_ref[...].astype(jnp.float32)
         + typ_ref[...].astype(jnp.float32))                  # (L, H) f32
    mu = jnp.mean(x, axis=-1, keepdims=True)
    var = jnp.mean(jnp.square(x - mu), axis=-1, keepdims=True)
    o_ref[0] = ((x - mu) * jax.lax.rsqrt(var + LN_EPS)
                * g_ref[...] + b_ref[...]).astype(o_ref.dtype)


# Attention -------------------------------------------------------------------

def _attention_kernel(qkv_ref, m_ref, o_ref):
    """qkv_ref: (1, L, 3, nh, Dh) bf16 (head-major [Q|K|V] QKV matmul output)."""
    nh = qkv_ref.shape[3]
    dh = qkv_ref.shape[4]
    scale = 1.0 / float(dh) ** 0.5
    bias = m_ref[0]                                           # (1, L) f32 mask bias
    ctx = []
    for h in range(nh):                                       # static unroll over heads
        q = qkv_ref[0, :, 0, h, :] * scale                    # scale folded into q
        k = qkv_ref[0, :, 1, h, :]
        v = qkv_ref[0, :, 2, h, :]
        s = jax.lax.dot_general(q, k, (((1,), (1,)), ((), ())),
                                preferred_element_type=jnp.float32)   # (L, L)
        s = s + bias
        s = s - jnp.max(s, axis=-1, keepdims=True)
        p = jnp.exp(s)
        p = p * pl.reciprocal(jnp.sum(p, axis=-1, keepdims=True), approx=True)
        ctx.append(jnp.dot(p.astype(v.dtype), v,
                           preferred_element_type=jnp.float32))       # (L, Dh)
    # lane-dense (L, H) store so the attn-out projection reads (M, H) directly.
    o_ref[0] = jnp.concatenate(ctx, axis=-1).astype(o_ref.dtype)


# ------------------------------ kernel wrappers -----------------------------

def fused_matmul(x, w, b, *, epilogue="bias", out_dtype=jnp.bfloat16,
                 residual=None, gamma=None, beta=None):
    """(M,K)x(K,N)+bias with fused epilogue; K whole -> weight resident in VMEM."""
    M, K = x.shape
    N = w.shape[1]
    tm = _pick_tile(M, 512, 8)
    grid = (M // tm,)

    x_spec = pl.BlockSpec((tm, K), lambda i: (i, 0))
    w_spec = pl.BlockSpec((K, N), lambda i: (0, 0))     # grid-invariant -> fetched once
    vec_spec = pl.BlockSpec((1, N), lambda i: (0, 0))
    row_spec = pl.BlockSpec((tm, N), lambda i: (i, 0))

    inputs = [x.astype(jnp.bfloat16), w.astype(jnp.bfloat16),
              b.reshape(1, N).astype(jnp.float32)]
    in_specs = [x_spec, w_spec, vec_spec]

    if epilogue == "bias":
        kernel = _mm_bias_kernel
    elif epilogue == "gelu":
        kernel = _mm_bias_gelu_kernel
    elif epilogue == "add_ln":
        kernel = _mm_bias_add_ln_kernel
        inputs += [residual, gamma.reshape(1, N).astype(jnp.float32),
                   beta.reshape(1, N).astype(jnp.float32)]
        in_specs += [row_spec, vec_spec, vec_spec]
    else:
        raise ValueError(epilogue)

    return pl.pallas_call(
        kernel,
        grid=grid,
        in_specs=in_specs,
        out_specs=row_spec,
        out_shape=jax.ShapeDtypeStruct((M, N), out_dtype),
        compiler_params=pltpu.CompilerParams(
            dimension_semantics=("parallel",),
            vmem_limit_bytes=VMEM_LIMIT_BYTES),
    )(*inputs)


def classifier_ce_loss(x, w, b, labels):
    """Classifier matmul fused with cross-entropy; vocab tiled with online LSE."""
    M, K = x.shape
    V = w.shape[1]
    tm = _pick_tile(M, 512, 8)
    # TODO(synk): pad V to a multiple of 128 (with -inf bias) for ragged vocab sizes.
    tv = _pick_tile(V, 2048, 128)
    grid = (M // tm, V // tv)
    per_loss, valid = pl.pallas_call(
        _mm_bias_ce_kernel,
        grid=grid,
        in_specs=[pl.BlockSpec((tm, K), lambda i, v: (i, 0)),
                  pl.BlockSpec((K, tv), lambda i, v: (0, v)),
                  pl.BlockSpec((1, tv), lambda i, v: (0, v)),
                  pl.BlockSpec((tm, 1), lambda i, v: (i, 0))],
        out_specs=(pl.BlockSpec((tm, 1), lambda i, v: (i, 0)),
                   pl.BlockSpec((tm, 1), lambda i, v: (i, 0))),
        out_shape=(jax.ShapeDtypeStruct((M, 1), jnp.float32),
                   jax.ShapeDtypeStruct((M, 1), jnp.float32)),
        scratch_shapes=[pltpu.VMEM((tm, 1), jnp.float32)] * 3,
        compiler_params=pltpu.CompilerParams(
            dimension_semantics=("parallel", "arbitrary"),
            vmem_limit_bytes=VMEM_LIMIT_BYTES),
    )(x.astype(jnp.bfloat16), w.astype(jnp.bfloat16),
      b.reshape(1, V).astype(jnp.float32),
      labels.reshape(M, 1).astype(jnp.int32))
    total = jnp.sum(per_loss)
    cnt = jnp.sum(valid)
    # TODO(synk): PyTorch CrossEntropyLoss yields NaN if every label is ignored;
    # we guard the denominator and return 0.0 in that case.
    return jnp.where(cnt > 0, total / cnt, 0.0)


def classifier_softmax(x, w, b):
    """Classifier matmul + exact softmax, vocab tiled (logits pass + LSE, then finalize)."""
    M, K = x.shape
    V = w.shape[1]
    tm = _pick_tile(M, 512, 8)
    tv = _pick_tile(V, 2048, 128)
    grid = (M // tm, V // tv)
    logits, lse = pl.pallas_call(
        _mm_bias_logits_lse_kernel,
        grid=grid,
        in_specs=[pl.BlockSpec((tm, K), lambda i, v: (i, 0)),
                  pl.BlockSpec((K, tv), lambda i, v: (0, v)),
                  pl.BlockSpec((1, tv), lambda i, v: (0, v))],
        out_specs=(pl.BlockSpec((tm, tv), lambda i, v: (i, v)),
                   pl.BlockSpec((tm, 1), lambda i, v: (i, 0))),
        out_shape=(jax.ShapeDtypeStruct((M, V), jnp.float32),
                   jax.ShapeDtypeStruct((M, 1), jnp.float32)),
        scratch_shapes=[pltpu.VMEM((tm, 1), jnp.float32)] * 2,
        compiler_params=pltpu.CompilerParams(
            dimension_semantics=("parallel", "arbitrary"),
            vmem_limit_bytes=VMEM_LIMIT_BYTES),
    )(x.astype(jnp.bfloat16), w.astype(jnp.bfloat16),
      b.reshape(1, V).astype(jnp.float32))
    probs = pl.pallas_call(
        _softmax_finalize_kernel,
        grid=grid,
        in_specs=[pl.BlockSpec((tm, tv), lambda i, v: (i, v)),
                  pl.BlockSpec((tm, 1), lambda i, v: (i, 0))],
        out_specs=pl.BlockSpec((tm, tv), lambda i, v: (i, v)),
        out_shape=jax.ShapeDtypeStruct((M, V), jnp.float32),
        compiler_params=pltpu.CompilerParams(
            dimension_semantics=("parallel", "parallel"),
            vmem_limit_bytes=VMEM_LIMIT_BYTES),
    )(logits, lse)
    return probs


def pallas_embedding_layernorm(word, pos, typ, gamma, beta,
                               out_dtype=jnp.bfloat16):
    """word: (B,L,H); pos: (L,H); typ: (H,) -> LayerNorm(word+pos+typ) bf16."""
    B, L, H = word.shape
    return pl.pallas_call(
        _emb_layernorm_kernel,
        grid=(B,),
        in_specs=[pl.BlockSpec((1, L, H), lambda b: (b, 0, 0)),
                  pl.BlockSpec((L, H), lambda b: (0, 0)),
                  pl.BlockSpec((1, H), lambda b: (0, 0)),
                  pl.BlockSpec((1, H), lambda b: (0, 0)),
                  pl.BlockSpec((1, H), lambda b: (0, 0))],
        out_specs=pl.BlockSpec((1, L, H), lambda b: (b, 0, 0)),
        out_shape=jax.ShapeDtypeStruct((B, L, H), out_dtype),
        compiler_params=pltpu.CompilerParams(
            dimension_semantics=("parallel",),
            vmem_limit_bytes=VMEM_LIMIT_BYTES),
    )(word, pos, typ.reshape(1, H),
      gamma.reshape(1, H).astype(jnp.float32),
      beta.reshape(1, H).astype(jnp.float32))


def pallas_attention(qkv, mask_bias):
    """qkv: (B, L, 3, nh, Dh) bf16; mask_bias: (B, 1, L) f32 -> (B, L, nh*Dh) bf16."""
    B, L, _, nh, dh = qkv.shape
    H = nh * dh
    # TODO(synk): on v7x, a (B, nh)-style grid would shrink live softmax state and
    # feed both TensorCores; kept per-batch here to stay within layout-safe BlockSpecs.
    return pl.pallas_call(
        _attention_kernel,
        grid=(B,),
        in_specs=[pl.BlockSpec((1, L, 3, nh, dh), lambda b: (b, 0, 0, 0, 0)),
                  pl.BlockSpec((1, 1, L), lambda b: (b, 0, 0))],
        out_specs=pl.BlockSpec((1, L, H), lambda b: (b, 0, 0)),
        out_shape=jax.ShapeDtypeStruct((B, L, H), jnp.bfloat16),
        compiler_params=pltpu.CompilerParams(
            dimension_semantics=("parallel",),
            vmem_limit_bytes=VMEM_LIMIT_BYTES),
    )(qkv, mask_bias)


# ---------------------------- model (glue in JAX) ---------------------------

def bert_encoder(params, cfg, token_ids, attention_mask):
    B, L = token_ids.shape
    H = cfg["hidden"]
    nh = cfg["num_heads"]
    Dh = H // nh
    M = B * L

    # token gather stays in XLA; embedding add + LayerNorm fused in one kernel
    word = params["word_emb"][token_ids]                 # (B, L, H) bf16
    pos = params["pos_emb"][:L]                          # (L, H) bf16
    typ = params["type_emb"][0]                          # (H,) bf16
    x = pallas_embedding_layernorm(word, pos, typ,
                                   params["emb_ln_g"], params["emb_ln_b"])
    x = x.reshape(M, H)                                  # free reshape, bf16

    mask_bias = ((1.0 - attention_mask.astype(jnp.float32))
                 * MASK_NEG)[:, None, :]                 # (B, 1, L)

    for layer in params["layers"]:
        # one fused QKV projection; columns laid out [Q | K | V], head-major inside,
        # so (M, 3H) -> (B, L, 3, nh, Dh) is a free contiguous reshape (no XLA transpose).
        qkv = fused_matmul(x, layer["wqkv"], layer["bqkv"])      # (M, 3H) bf16
        qkv = qkv.reshape(B, L, 3, nh, Dh)
        ctx = pallas_attention(qkv, mask_bias)                   # (B, L, H) bf16
        ctx = ctx.reshape(M, H)                                  # free reshape

        # attention output projection fused with residual-add + LayerNorm1
        x = fused_matmul(ctx, layer["wo"], layer["bo"], epilogue="add_ln",
                         residual=x, gamma=layer["ln1_g"], beta=layer["ln1_b"])
        # FFN: matmul+bias+GELU, then matmul fused with residual-add + LayerNorm2
        h = fused_matmul(x, layer["w1"], layer["b1"], epilogue="gelu")
        x = fused_matmul(h, layer["w2"], layer["b2"], epilogue="add_ln",
                         residual=x, gamma=layer["ln2_g"], beta=layer["ln2_b"])
    # TODO(synk): BERT pooler output is discarded by the PyTorch module, so it
    # is not computed here.
    return x  # (B*L, H) bf16


def language_model_forward(params, cfg, x, mask=None, y=None):
    """Mirrors LanguageModel.forward: loss if y is given, else softmax probs."""
    B, L = x.shape
    if mask is None:
        mask = jnp.ones((B, L), jnp.float32)
    seq = bert_encoder(params, cfg, x, mask)
    if y is not None:
        return classifier_ce_loss(seq, params["wc"], params["bc"], y.reshape(-1))
    probs = classifier_softmax(seq, params["wc"], params["bc"])
    return probs.reshape(B, L, -1)


# ------------------------------ parameter init ------------------------------

def init_params(key, cfg):
    H, V = cfg["hidden"], cfg["vocab_size"]
    I, P = cfg["intermediate"], cfg["max_pos"]

    def normal(k, shape, dtype=jnp.bfloat16):
        return (0.02 * jax.random.normal(k, shape)).astype(dtype)

    keys = jax.random.split(key, 4 + cfg["num_layers"])
    params = {
        "word_emb": normal(keys[0], (V, H)),
        "pos_emb": normal(keys[1], (P, H)),
        "type_emb": normal(keys[2], (2, H)),
        "emb_ln_g": jnp.ones((H,), jnp.float32),
        "emb_ln_b": jnp.zeros((H,), jnp.float32),
        "layers": [],
    }
    for li in range(cfg["num_layers"]):
        lk = jax.random.split(keys[4 + li], 4)
        params["layers"].append({
            # fused Q/K/V projection: columns are [Q | K | V], head-major inside
            "wqkv": normal(lk[0], (H, 3 * H)),
            "bqkv": jnp.zeros((3 * H,), jnp.float32),
            "wo": normal(lk[1], (H, H)), "bo": jnp.zeros((H,), jnp.float32),
            "ln1_g": jnp.ones((H,), jnp.float32),
            "ln1_b": jnp.zeros((H,), jnp.float32),
            "w1": normal(lk[2], (H, I)), "b1": jnp.zeros((I,), jnp.float32),
            "w2": normal(lk[3], (I, H)), "b2": jnp.zeros((H,), jnp.float32),
            "ln2_g": jnp.ones((H,), jnp.float32),
            "ln2_b": jnp.zeros((H,), jnp.float32),
        })
    ck = jax.random.split(keys[3], 2)
    params["wc"] = normal(ck[0], (H, V))          # classify: Linear(H, V)
    params["bc"] = jnp.zeros((V,), jnp.float32)
    return params


# ----------------------------------- main -----------------------------------

if __name__ == "__main__":
    cfg = dict(vocab_size=128, hidden=32, num_layers=2, num_heads=2,
               intermediate=64, max_pos=16)

    key = jax.random.PRNGKey(0)
    pkey, xkey, ykey = jax.random.split(key, 3)
    params = init_params(pkey, cfg)

    B, L = 2, 8
    x = jax.random.randint(xkey, (B, L), 0, cfg["vocab_size"], dtype=jnp.int32)
    mask = jnp.ones((B, L), jnp.float32).at[1, 6:].set(0.0)   # pad last 2 tokens
    y = jax.random.randint(ykey, (B, L), 0, cfg["vocab_size"], dtype=jnp.int32)
    y = y.at[1, 6:].set(-1)                                   # ignore_index = -1

    # inference branch: softmax(classify(bert(x)))
    probs = language_model_forward(params, cfg, x)
    # training branch: CrossEntropyLoss(classify(bert(x, mask)), y)
    loss = language_model_forward(params, cfg, x, mask=mask, y=y)

    jax.block_until_ready((probs, loss))
    assert probs.shape == (B, L, cfg["vocab_size"])
    assert probs.dtype == jnp.float32 and loss.dtype == jnp.float32
    assert bool(jnp.isfinite(loss))
    print("KERNEL_OK")
</pallas_src>

<mosaic_0001>
module attributes {stable_mosaic.version = 11 : i64} {
  func.func @_emb_layernorm_kernel(%arg0: i32, %arg1: memref<1x8x32xbf16, #tpu.memory_space<vmem>>, %arg2: memref<8x32xbf16, #tpu.memory_space<vmem>>, %arg3: memref<1x32xbf16, #tpu.memory_space<vmem>>, %arg4: memref<1x32xf32, #tpu.memory_space<vmem>>, %arg5: memref<1x32xf32, #tpu.memory_space<vmem>>, %arg6: memref<1x8x32xbf16, #tpu.memory_space<vmem>>) attributes {dimension_semantics = [#tpu.dimension_semantics<parallel>], iteration_bounds = array<i64: 2>, scalar_prefetch = 0 : i64, scratch_operands = 0 : i64, tpu.core_type = #tpu.core_type<tc>, window_params = [{transform_indices = @transform_0, window_bounds = array<i64: 1, 8, 32>}, {pipeline_mode = #tpu.pipeline_mode<synchronous>, transform_indices = @transform_1, window_bounds = array<i64: 8, 32>}, {pipeline_mode = #tpu.pipeline_mode<synchronous>, transform_indices = @transform_2, window_bounds = array<i64: 1, 32>}, {pipeline_mode = #tpu.pipeline_mode<synchronous>, transform_indices = @transform_3, window_bounds = array<i64: 1, 32>}, {pipeline_mode = #tpu.pipeline_mode<synchronous>, transform_indices = @transform_4, window_bounds = array<i64: 1, 32>}, {transform_indices = @transform_5, window_bounds = array<i64: 1, 8, 32>}]} {
    %c0 = arith.constant 0 : index
    %c0_0 = arith.constant 0 : index
    %c0_1 = arith.constant 0 : index
    %0 = vector.load %arg1[%c0, %c0_0, %c0_1] : memref<1x8x32xbf16, #tpu.memory_space<vmem>>, vector<1x8x32xbf16>
    %1 = vector.shape_cast %0 : vector<1x8x32xbf16> to vector<8x32xbf16>
    %2 = arith.extf %1 : vector<8x32xbf16> to vector<8x32xf32>
    %c0_2 = arith.constant 0 : index
    %c0_3 = arith.constant 0 : index
    %3 = vector.load %arg2[%c0_2, %c0_3] : memref<8x32xbf16, #tpu.memory_space<vmem>>, vector<8x32xbf16>
    %4 = arith.extf %3 : vector<8x32xbf16> to vector<8x32xf32>
    %5 = arith.addf %2, %4 : vector<8x32xf32>
    %c0_4 = arith.constant 0 : index
    %c0_5 = arith.constant 0 : index
    %6 = vector.load %arg3[%c0_4, %c0_5] : memref<1x32xbf16, #tpu.memory_space<vmem>>, vector<1x32xbf16>
    %7 = arith.extf %6 : vector<1x32xbf16> to vector<1x32xf32>
    %8 = vector.broadcast %7 : vector<1x32xf32> to vector<8x32xf32>
    %9 = arith.addf %5, %8 : vector<8x32xf32>
    %cst = arith.constant dense<0.000000e+00> : vector<8xf32>
    %10 = vector.multi_reduction <add>, %9, %cst [1] : vector<8x32xf32> to vector<8xf32>
    %11 = vector.shape_cast %10 : vector<8xf32> to vector<8x1xf32>
    %cst_6 = arith.constant 3.200000e+01 : f32
    %12 = vector.broadcast %cst_6 : f32 to vector<8x1xf32>
    %13 = arith.divf %11, %12 : vector<8x1xf32>
    %14 = vector.broadcast %13 : vector<8x1xf32> to vector<8x32xf32>
    %15 = arith.subf %9, %14 : vector<8x32xf32>
    %16 = arith.mulf %15, %15 : vector<8x32xf32>
    %cst_7 = arith.constant dense<0.000000e+00> : vector<8xf32>
    %17 = vector.multi_reduction <add>, %16, %cst_7 [1] : vector<8x32xf32> to vector<8xf32>
    %18 = vector.shape_cast %17 : vector<8xf32> to vector<8x1xf32>
    %cst_8 = arith.constant 3.200000e+01 : f32
    %19 = vector.broadcast %cst_8 : f32 to vector<8x1xf32>
    %20 = arith.divf %18, %19 : vector<8x1xf32>
    %21 = vector.broadcast %13 : vector<8x1xf32> to vector<8x32xf32>
    %22 = arith.subf %9, %21 : vector<8x32xf32>
    %cst_9 = arith.constant 9.99999996E-13 : f32
    %23 = vector.broadcast %cst_9 : f32 to vector<8x1xf32>
    %24 = arith.addf %20, %23 : vector<8x1xf32>
    %25 = math.rsqrt %24 : vector<8x1xf32>
    %26 = vector.broadcast %25 : vector<8x1xf32> to vector<8x32xf32>
    %27 = arith.mulf %22, %26 : vector<8x32xf32>
    %c0_10 = arith.constant 0 : index
    %c0_11 = arith.constant 0 : index
    %28 = vector.load %arg4[%c0_10, %c0_11] : memref<1x32xf32, #tpu.memory_space<vmem>>, vector<1x32xf32>
    %29 = vector.broadcast %28 : vector<1x32xf32> to vector<8x32xf32>
    %30 = arith.mulf %27, %29 : vector<8x32xf32>
    %c0_12 = arith.constant 0 : index
    %c0_13 = arith.constant 0 : index
    %31 = vector.load %arg5[%c0_12, %c0_13] : memref<1x32xf32, #tpu.memory_space<vmem>>, vector<1x32xf32>
    %32 = vector.broadcast %31 : vector<1x32xf32> to vector<8x32xf32>
    %33 = arith.addf %30, %32 : vector<8x32xf32>
    %34 = arith.truncf %33 : vector<8x32xf32> to vector<8x32xbf16>
    %c0_14 = arith.constant 0 : index
    %c0_15 = arith.constant 0 : index
    %c0_16 = arith.constant 0 : index
    %35 = vector.load %arg6[%c0_14, %c0_15, %c0_16] : memref<1x8x32xbf16, #tpu.memory_space<vmem>>, vector<1x8x32xbf16>
    %36 = vector.shape_cast %35 : vector<1x8x32xbf16> to vector<8x32xbf16>
    %37 = vector.shape_cast %34 : vector<8x32xbf16> to vector<1x8x32xbf16>
    tpu.vector_store %arg6[%c0_14, %c0_15, %c0_16], %37 {strides = array<i32>} : memref<1x8x32xbf16, #tpu.memory_space<vmem>>, vector<1x8x32xbf16>,
    return
  }
  func.func @transform_0(%arg0: i32) -> (i32, i32, i32) {
    %c0_i32 = arith.constant 0 : i32
    %c0_i32_0 = arith.constant 0 : i32
    %c0_i32_1 = arith.constant 0 : i32
    return %arg0, %c0_i32, %c0_i32_0 : i32, i32, i32
  }
  func.func @transform_1(%arg0: i32) -> (i32, i32) {
    %c0_i32 = arith.constant 0 : i32
    %c0_i32_0 = arith.constant 0 : i32
    %c0_i32_1 = arith.constant 0 : i32
    return %c0_i32, %c0_i32_0 : i32, i32
  }
  func.func @transform_2(%arg0: i32) -> (i32, i32) {
    %c0_i32 = arith.constant 0 : i32
    %c0_i32_0 = arith.constant 0 : i32
    %c0_i32_1 = arith.constant 0 : i32
    return %c0_i32, %c0_i32_0 : i32, i32
  }
  func.func @transform_3(%arg0: i32) -> (i32, i32) {
    %c0_i32 = arith.constant 0 : i32
    %c0_i32_0 = arith.constant 0 : i32
    %c0_i32_1 = arith.constant 0 : i32
    return %c0_i32, %c0_i32_0 : i32, i32
  }
  func.func @transform_4(%arg0: i32) -> (i32, i32) {
    %c0_i32 = arith.constant 0 : i32
    %c0_i32_0 = arith.constant 0 : i32
    %c0_i32_1 = arith.constant 0 : i32
    return %c0_i32, %c0_i32_0 : i32, i32
  }
  func.func @transform_5(%arg0: i32) -> (i32, i32, i32) {
    %c0_i32 = arith.constant 0 : i32
    %c0_i32_0 = arith.constant 0 : i32
    %c0_i32_1 = arith.constant 0 : i32
    return %arg0, %c0_i32, %c0_i32_0 : i32, i32, i32
  }
}

</mosaic_0001>

<bundles_post_ra>
// kernel: tpu_custom_call.1
= control target key start
LH: loop header
LB: loop body
LE: loop exit
PB: predicated region body
PF: predicated region fallthrough
CT: control target
= control target key end

     0   :  { %10 = vsyncpa [#allocation3], 0  ;;  %s845_s0 = inlined_call_operand.hbm [shape: bf16[2,8,32], index: 0, kind: input, shape index: {}]   ;;  %s846_s1 = inlined_call_operand.hbm [shape: bf16[8,32], index: 1, kind: input, shape index: {}]   ;;  %s847_s2 = inlined_call_operand.vmem [shape: bf16[1,32], index: 2, kind: input, shape index: {}]   ;;  %s848_s3 = inlined_call_operand.vmem [shape: f32[1,32], index: 3, kind: input, shape index: {}]   ;;  %s849_s4 = inlined_call_operand.vmem [shape: f32[1,32], index: 4, kind: input, shape index: {}]   ;;  %s850_s5 = inlined_call_operand.hbm [shape: bf16[2,8,32], index: 5, kind: output, shape index: {}]  }
   0x1   :  { %12 = vsyncpa [#allocation3 + $0x1], 0 }
   0x2   :  { %13 = vsyncpa [#allocation6], 0 }
   0x3   :  { %14 = vsyncpa [#allocation4], 0 }
   0x4   :  { %16 = vsyncpa [#allocation4 + $0x1], 0  ;;  %s631_s18 = smov 0   ;;  %s633_s19 = smov 0  }
   0x5   :  { %s635_s20 = smov 0   ;;  %s637_s21 = smov 0  }
   0x6 LB: > { %s652_s22 = sadd.s32 4294967295, %s596_s21   ;;  %s393_s23 = sadd.s32 4294967294, %s596_s21   ;;  %s596_s21 = sphi %s637_s21, %s874_s21   ;;  %s592_s20 = sphi %s635_s20, %s873_s20   ;;  %s588_s19 = sphi %s633_s19, %s872_s19   ;;  %s584_s18 = sphi %s631_s18, %s871_s18  }
   0x7   : > { %p42_p0 = scmp.ne.s32.totalorder %s588_s19, %s584_s18  ;;  %p851_p1 = scmp.eq.s32.totalorder %s652_s22, 0 }
   0x8   : > { %p156_p3 = scmp.eq.s32.totalorder %s393_s23, 1  ;;  %p394_p5 = scmp.ge.s32.totalorder %s596_s21, 1 }
   0x9   : > { %p661_p4 = por %p851_p1, %p42_p0  ;;  %p163_p7 = scmp.lt.s32.totalorder %s596_s21, 3 }
   0xa   : > { %p666_p6 = por %p156_p3, %p42_p0  ;;  %s598_s27 = smov [#allocation5]  }
   0xb   : > { %s854_s24 = scalar_select %p661_p4, 1, 0 }
   0xc   : > { %s855_s25 = scalar_select %p666_p6, 1, 0 }
   0xd   : > { %p671_p8 = pnand %p394_p5, %p163_p7  ;;  %s176_s28 = sshll.u32 %s598_s27, 4  ;;  %s177_s28 = int_to_ptr.vmem [resolvable:$true] %s176_s28 }
   0xe   : > { %s679_s29 = sadd.s32 1, %s596_s21   ;;  %s29_s8 = sadd.s32 1, %s592_s20 }
   0xf   : > { %s856_s26 = scalar_select %p671_p8, 1, 0 }
  0x10   : > { %p417_p10 = pneg %p671_p8  ;;  %s26_s6 = ssub.s32 %s596_s21, %s679_s29 }
  0x11   : > { %p689_p12 = scmp.eq.s32.totalorder %s26_s6, 0  ;;  %s468_s11 = scalar_lea.hbm %s846_s1, 64 }
  0x12   : > { %p683_p11 = pnand %p417_p10, %p851_p1  ;;  %p469_p0 = scmp.ne.s32.totalorder %s846_s1, %s468_s11 }
  0x13   : > { %s858_s7 = scalar_select %p689_p12, 1, 0 }
  0x14   : > { %p470_p3 = pneg %p683_p11  ;;  %p475_p10 = scmp.lt.u32.totalorder %s468_s11, %s846_s1 }
  0x16   : > { %p471_p5 = pnand %p470_p3, %p469_p0 }
  0x18   : > { %p472_p7 = pneg %p471_p5 }
  0x1a   : > { %p477_p9 = pnand %p475_p10, %p472_p7 }
  0x1c   : > { %480 = shalt.err (!%p477_p9)
}
  0x1d   : > { %s481_s16 = scalar_lea.vmem %s177_s28, 64  ;;  %p489_p6 = scmp.lt.s32.totalorder %s177_s28, %s177_s28 }
  0x1e   : > { %p482_p1 = scmp.ne.s32.totalorder %s177_s28, %s481_s16  ;;  %p490_p4 = scmp.lt.s32.totalorder %s481_s16, %s481_s16 }
  0x20   : > { %p484_p2 = pnand %p482_p1, %p470_p3  ;;  %p491_p8 = por %p490_p4, %p489_p6 }
  0x22   : > { %p485_p13 = pneg %p484_p2 }
  0x24   : > { %p492_p12 = pnand %p491_p8, %p485_p13 }
  0x26   : > { %495 = shalt.err (!%p492_p12)
}
  0x27   : > { %420 = dma.hbm_to_vmem [thread:$0]  (!%p683_p11), %s846_s1, 64, %s177_s28, [#allocation6]  }
  0x28   : > { %p859_p1 = scmp.ne.s32.totalorder %s858_s7, 0  ;;  %p37_p2 = scmp.eq.s32.totalorder %s596_s21, 0 }
  0x29   : > { %p860_p4 = scmp.ne.s32.totalorder %s592_s20, %s588_s19  ;;  %p861_p6 = scmp.eq.s32.totalorder %s652_s22, 1 }
  0x2a   : > { %s715_s27 = scalar_select %p859_p1, %s592_s20, %s29_s8  }
  0x2b   : > { %p723_p8 = por %p861_p6, %p860_p4  ;;  %p430_p9 = scmp.lt.s32.totalorder %s596_s21, 2 }
  0x2c   : > { %s196_s6 = sand.u32 1, %s592_s20   ;;  %p863_p12 = pmov %p860_p4 }
  0x2d   : > { %s397_s9 = sshll.u32 %s196_s6, 2  ;;  %s398_s10 = sshll.u32 %s596_s21, 6 }
  0x2e   : > { %p38_p13 = por %p37_p2, %p863_p12  ;;  %s736_s28 = scalar_lea.hbm %s845_s0, %s398_s10 }
  0x2f   : > { %s200_s7 = scalar_lea.vmem [#allocation2], %s397_s9  ;;  %s197_s14 = scalar_lea.sflag [#allocation3], %s196_s6 }
  0x30   : > { %s207_s8 = sshll.u32 %s200_s7, 4  ;;  %p738_p11 = pnand %p430_p9, %p38_p13  ;;  %s742_s8 = int_to_ptr.vmem [resolvable:$true] %s207_s8 }
  0x31   : > { %s496_s15 = scalar_lea.hbm %s736_s28, 64  ;;  %s501_s23 = scalar_lea.hbm %s845_s0, 128 }
  0x32   : > { %p497_p0 = scmp.ne.s32.totalorder %s736_s28, %s496_s15  ;;  %p498_p3 = pneg %p738_p11 }
  0x33   : > { %p502_p10 = scmp.lt.u32.totalorder %s736_s28, %s845_s0  ;;  %p503_p1 = scmp.lt.u32.totalorder %s501_s23, %s496_s15 }
  0x34   : > { %p499_p5 = pnand %p498_p3, %p497_p0  ;;  %p505_p4 = scmp.lt.u32.totalorder %s496_s15, %s736_s28 }
  0x35   : > { %p504_p2 = por %p503_p1, %p502_p10 }
  0x36   : > { %p500_p7 = pneg %p499_p5 }
  0x37   : > { %p506_p6 = por %p505_p4, %p504_p2 }
  0x39   : > { %p507_p9 = pnand %p506_p6, %p500_p7 }
  0x3b   : > { %510 = shalt.err (!%p507_p9)
}
  0x3c   : > { %s511_s6 = scalar_lea.vmem %s742_s8, 64  ;;  %s599_s11 = smov [#allocation2]  }
  0x3d   : > { %p512_p12 = scmp.ne.s32.totalorder %s742_s8, %s511_s6  ;;  %s516_s12 = sshll.u32 %s599_s11, 4  ;;  %s517_s12 = int_to_ptr.vmem [resolvable:$false] %s516_s12 }
  0x3e   : > { %s518_s7 = scalar_lea.vmem %s517_s12, 128  ;;  %p519_p5 = scmp.lt.s32.totalorder %s742_s8, %s517_s12 }
  0x3f   : > { %p514_p13 = pnand %p512_p12, %p498_p3  ;;  %p520_p10 = scmp.lt.s32.totalorder %s518_s7, %s511_s6 }
  0x41   : > { %p515_p0 = pneg %p514_p13  ;;  %p521_p1 = por %p520_p10, %p519_p5 }
  0x43   : > { %p522_p2 = pnand %p521_p1, %p515_p0 }
  0x45   : > { %525 = shalt.err (!%p522_p2)
}
  0x46   : > { %424 = dma.hbm_to_vmem [thread:$0]  (!%p738_p11), %s736_s28, 64, %s742_s8, %s197_s14  }
  0x47   : > { %p865_p7 = scmp.ne.s32.totalorder %s856_s26, 0 }
  0x48   : > { %s772_s15 = sand.u32 (!%p865_p7), 1, %s588_s19   ;;  %p866_p3 = scmp.ne.s32.totalorder (!%p865_p7), %s854_s24, 0 }
  0x49   : > { %216 = sbr.rel (%p865_p7) target bundleno = 423 (0x1a7), region = 40  ;;  %s400_s16 = sshll.u32 (!%p865_p7), %s772_s15, 2 }
  0x4a   : > { %s219_s17 = scalar_lea.sflag (!%p865_p7), [#allocation3], %s772_s15  ;;  %s222_s23 = scalar_lea.vmem (!%p865_p7), [#allocation2], %s400_s16 }
  0x50   : > { %571 = dma.done.wait (%p866_p3), %s219_s17, 64  }
  0x51   : > { %573 = vsyncadd (%p866_p3), %s219_s17, 4294967232  ;;  %p867_p11 = scmp.eq.s32.totalorder %s652_s22, 0 }
  0x53   : > { %575 = dma.done.wait (%p867_p11), [#allocation6], 64   ;;  %p868_p4 = pmov %p867_p11 }
  0x54   : > { %v260_v0 = vlaneseq  ;;  %v253_v3 = vld [vmem:[%s222_s23] sm:$0xf]  ;;  %v255_v4 = vld [vmem:[#allocation5] sm:$0xf]  ;;  %vm265_vm0 = vcmask 261120   ;;  %s406_s9 = sshll.u32 %s652_s22, 6 }
  0x55   : > { %577 = vsyncadd (%p868_p4), [#allocation6], 4294967232  ;;  %v258_v5 = vld [vmem:[%s847_s2] sm:$0x1]  ;;  %v254_v6 = vunpack.c.l.bf16 %v253_v3  ;;  %v256_v7 = vunpack.c.l.bf16 %v255_v4  ;;  %s252_s10 = scalar_lea.vmem [#allocation7], %s400_s16  ;;  %vm297_vm1 = vcmask 257024   ;;  %s801_s7 = scalar_lea.hbm %s850_s5, %s406_s9 }
  0x56   : > { %v261_v1 = vshrl.u32 %v260_v0, 7  ;;  %v259_v8 = vunpack.c.l.bf16 %v258_v5  ;;  %v403_v22 = vld [vmem:[%s848_s3] ss:$0 sm:$0xff]  ;;  %s313_s6 = sshll.u32 %s252_s10, 4  ;;  %s300_s17 = scalar_lea.sflag [#allocation4], %s772_s15  ;;  %s803_s6 = int_to_ptr.vmem [resolvable:$true] %s313_s6 }
  0x57   : > { %v257_v9 = vadd.f32 %v256_v7, %v254_v6  ;;  %v404_v24 = vld [vmem:[%s849_s4] ss:$0 sm:$0xff]  ;;  %s526_s23 = scalar_lea.vmem %s803_s6, 64  ;;  %s600_s22 = smov [#allocation7]  }
  0x58   : > { %v262_v2 = vsub.s32 0, %v261_v1  ;;  %p527_p6 = scmp.ne.s32.totalorder %s803_s6, %s526_s23  ;;  %s530_s16 = sshll.u32 %s600_s22, 4  ;;  %s531_s16 = int_to_ptr.vmem [resolvable:$false] %s530_s16 }
  0x59   : > { %s532_s26 = scalar_lea.vmem %s531_s16, 128  ;;  %p533_p13 = scmp.lt.s32.totalorder %s803_s6, %s531_s16 }
  0x5a   : > { %v263_v10 = vrot.slane %v259_v8, %v262_v2  ;;  %p528_p9 = pnand %p527_p6, %p723_p8  ;;  %p534_p0 = scmp.lt.s32.totalorder %s532_s26, %s526_s23 }
  0x5c   : > { %v264_v11 = vadd.f32 %v263_v10, %v257_v9  ;;  %p529_p12 = pneg %p528_p9  ;;  %p535_p5 = por %p534_p0, %p533_p13 }
  0x5e   : > { %v266_v12 = vsel %vm265_vm0, %v264_v11, 0.0  ;;  %p536_p10 = pnand %p535_p5, %p529_p12 }
  0x5f   : > { %267 = vadd.xlane.f32.xlu0 %v266_v12 }
  0xec   : > { %v268_v13 = vpop.xlane.xlu0 %267 }
  0xed   : > { %v270_v14 = vmul.f32 0.03125, %v268_v13 }
  0xef   : > { %v271_v15 = vsub.f32 %v264_v11, %v270_v14 }
  0xf1   : > { %v272_v16 = vmul.f32 %v271_v15, %v271_v15 }
  0xf3   : > { %v273_v17 = vsel %vm265_vm0, %v272_v16, 0.0 }
  0xf4   : > { %274 = vadd.xlane.f32.xlu0 %v273_v17 }
 0x181   : > { %v275_v18 = vpop.xlane.xlu0 %274 }
 0x182   : > { %v276_v19 = vmul.f32 0.03125, %v275_v18 }
 0x184   : > { %v277_v20 = vadd.f32 1e-12, %v276_v19 }
 0x186   : > { %466 = vrsqrt.f32 %v277_v20 }
 0x190   : > { %v467_v21 = vpop.eup %466 }
 0x191   : > { %v279_v23 = vmul.f32 %v467_v21, %v271_v15 }
 0x193   : > { %v287_v25 = vmul.f32 %v403_v22, %v279_v23 }
 0x195   : > { %v295_v26 = vadd.f32 %v404_v24, %v287_v25 }
 0x197   : > { %v296_v27 = vpack.c.bf16 %v295_v26, %v295_v26 }
 0x199   : > { %298 = vst.msk [vmem:[%s252_s10] sm:$0xf] %vm297_vm1, %v296_v27 }
 0x19a   : > { %539 = shalt.err (!%p536_p10)
}
 0x19b   : > { %s540_s15 = scalar_lea.hbm %s801_s7, 64  ;;  %s544_s8 = scalar_lea.hbm %s850_s5, 128 }
 0x19c   : > { %p541_p1 = scmp.ne.s32.totalorder %s801_s7, %s540_s15  ;;  %p545_p3 = scmp.lt.u32.totalorder %s801_s7, %s850_s5 }
 0x19d   : > { %p546_p11 = scmp.lt.u32.totalorder %s544_s8, %s540_s15  ;;  %p548_p6 = scmp.lt.u32.totalorder %s540_s15, %s801_s7 }
 0x19e   : > { %p542_p2 = pnand %p541_p1, %p723_p8 }
 0x19f   : > { %p547_p4 = por %p546_p11, %p545_p3 }
 0x1a0   : > { %p543_p7 = pneg %p542_p2 }
 0x1a1   : > { %p549_p9 = por %p548_p6, %p547_p4 }
 0x1a3   : > { %p550_p12 = pnand %p549_p9, %p543_p7 }
 0x1a5   : > { %553 = shalt.err (!%p550_p12)
}
 0x1a6   : > { %415 = dma.vmem_to_hbm [thread:$0]  (%p723_p8), %s803_s6, 64, %s801_s7, %s300_s17  }
 0x1a7 PF: > { %s325_s9 = sand.u32 1, %s584_s18   ;;  %p869_p13 = scmp.ne.s32.totalorder %s855_s25, 0 }
 0x1a8   : > { %p870_p0 = scmp.ge.s32.totalorder %s596_s21, 2  ;;  %s326_s10 = scalar_lea.sflag [#allocation4], %s325_s9 }
 0x1aa   : > { %p426_p5 = pnand %p870_p0, %p869_p13 }
 0x1ac   : > { %579 = dma.done.wait (!%p426_p5), %s326_s10, 64  }
 0x1ad   : > { %581 = vsyncadd (!%p426_p5), %s326_s10, 4294967232  ;;  %p19_p10 = scmp.ge.s32.totalorder %s679_s29, 4   ;;  %s871_s18 = smov %s588_s19 }
 0x1ae   : > { %s872_s19 = smov %s592_s20  ;;  %s873_s20 = smov %s715_s27 }
 0x1af   : > { %s874_s21 = smov %s679_s29  ;;  %21 = sbr.rel (!%p19_p10) target bundleno = 6 (0x6), region = 89 }
 0x1b6   :  { %331 = vsyncpa [#allocation3], 1 }
 0x1b7   :  { %333 = vsyncpa [#allocation3 + $0x1], 1 }
 0x1b8   :  { %334 = vsyncpa [#allocation6], 1 }
 0x1b9   :  { %335 = vsyncpa [#allocation4], 1 }
 0x1ba   :  { %337 = vsyncpa [#allocation4 + $0x1], 1 }

</bundles_post_ra>
